<compile_context>
chip_gen: v7x
topology: tpu7x:2x2x1
jax: 0.10.0
libtpu: 0.0.40
codegen_flags: <defaults>
</compile_context>

<pallas_src>
import functools

import jax
import jax.numpy as jnp
import numpy as np
from jax.experimental import pallas as pl
from jax.experimental.pallas import tpu as pltpu


# ------------------------------- helpers -------------------------------------


def _round_up(v, m):
    return (v + m - 1) // m * m


def _pick_tile(length, cap):
    """Largest length tile <= cap that divides `length` (multiple of 128 when tiling)."""
    if length <= cap:
        return length
    for t in (2048, 1024, 512, 256, 128):
        if t <= cap and length % t == 0:
            return t
    return length  # awkward L: fall back to a single tile (correctness first)


# ------------------------------- kernels -------------------------------------


def _upconv_fused_kernel(x_ref, w_ref, b_ref, xl_ref, xr_ref, o_ref):
    """One (2C,3C)@(3C,TL) MXU dot; writes the interleaved (C, 2*TL) output block.

    x_ref : (1, Cp, TL)    w_ref : (2Cp, 3Cp)   b_ref : (Cp, 1)
    xl_ref/xr_ref : (1, 1, Cp, 1) halo columns x[:, tile_start-1] / x[:, tile_end+1] (0 at edges)
    o_ref : (1, Cp, 2*TL)
    """
    x = x_ref[0]                                            # (Cp, TL) f32
    c, tl = x.shape
    lane = jax.lax.broadcasted_iota(jnp.int32, (c, tl), 1)

    # +/-1 lane shifts via XLU roll; boundary column comes from the halo operands.
    x_prev = jnp.where(lane == 0, xl_ref[0, 0], pltpu.roll(x, shift=1, axis=1))
    x_next = jnp.where(lane == tl - 1, xr_ref[0, 0], pltpu.roll(x, shift=tl - 1, axis=1))

    rhs = jnp.concatenate([x, x_prev, x_next], axis=0)      # (3Cp, TL), 8-aligned offsets
    z = jnp.dot(w_ref[...], rhs, preferred_element_type=jnp.float32)   # (2Cp, TL)

    b = b_ref[...]                                          # (Cp, 1)
    even = z[:c] + b                                        # y[:, 2m]
    odd = z[c:] + b                                         # y[:, 2m+1]

    # Fused even/odd lane interleave (minor-dim reshape) -> lane-dense single-pass output.
    o_ref[0] = jnp.stack([even, odd], axis=-1).reshape(c, 2 * tl).astype(o_ref.dtype)


def _upconv_compat_kernel(x_ref, w_ref, b_ref, oe_ref, oo_ref):
    """Fallback (used only if the runtime probe rejects the fused kernel): single fused
    (4C,C)@(C,L) dot, slice+concat shifts, split even/odd outputs (interleave done by XLA)."""
    x = x_ref[0]                                            # (Cp, L)
    c, l = x.shape
    z = jnp.dot(w_ref[...], x, preferred_element_type=jnp.float32)     # (4Cp, L)
    ze, zp, zo, zn = z[:c], z[c:2 * c], z[2 * c:3 * c], z[3 * c:]
    zcol = jnp.zeros((c, 1), jnp.float32)
    zp = jnp.concatenate([zcol, zp[:, : l - 1]], axis=1)    # col m holds W0 @ x[:, m-1]
    zn = jnp.concatenate([zn[:, 1:], zcol], axis=1)         # col m holds W2 @ x[:, m+1]
    b = b_ref[...]
    oe_ref[0] = (ze + zp + b).astype(oe_ref.dtype)
    oo_ref[0] = (zo + zn + b).astype(oo_ref.dtype)


def _upsample_only_kernel(x_ref, o_ref):
    """Pure nearest-x2 upsample: write the interleaved (rb, 2*TL) block directly (no MXU)."""
    v = x_ref[...]
    r, tl = v.shape
    o_ref[...] = jnp.stack([v, v], axis=-1).reshape(r, 2 * tl).astype(o_ref.dtype)


# ---------------------------- pallas wrappers ---------------------------------


def _conv_fused(x, w0, w1, w2, b2):
    N, Cp, L = x.shape
    TL = _pick_tile(L, 512)          # per-generation: raise cap / vmem_limit_bytes if desired
    T = L // TL

    zz = jnp.zeros_like(w0)
    w_big = jnp.concatenate(
        [jnp.concatenate([w1 + w2, w0, zz], axis=1),
         jnp.concatenate([w0 + w1, zz, w2], axis=1)], axis=0)           # (2Cp, 3Cp)

    # Tiny per-tile halo columns (N, T, Cp, 1): x[:, tile_start-1] and x[:, tile_end+1].
    li = jnp.arange(T) * TL - 1
    ri = jnp.arange(T) * TL + TL
    xl = jnp.where((li < 0)[None, :, None, None], 0.0,
                   jnp.transpose(jnp.take(x, jnp.clip(li, 0, L - 1), axis=2), (0, 2, 1))[..., None])
    xr = jnp.where((ri >= L)[None, :, None, None], 0.0,
                   jnp.transpose(jnp.take(x, jnp.clip(ri, 0, L - 1), axis=2), (0, 2, 1))[..., None])

    return pl.pallas_call(
        _upconv_fused_kernel,
        out_shape=jax.ShapeDtypeStruct((N, Cp, 2 * L), x.dtype),
        grid=(N, T),
        in_specs=[
            pl.BlockSpec((1, Cp, TL), lambda n, j: (n, 0, j)),
            pl.BlockSpec((2 * Cp, 3 * Cp), lambda n, j: (0, 0)),        # grid-invariant weights
            pl.BlockSpec((Cp, 1), lambda n, j: (0, 0)),                 # grid-invariant bias
            pl.BlockSpec((1, 1, Cp, 1), lambda n, j: (n, j, 0, 0)),     # left halo column
            pl.BlockSpec((1, 1, Cp, 1), lambda n, j: (n, j, 0, 0)),     # right halo column
        ],
        out_specs=pl.BlockSpec((1, Cp, 2 * TL), lambda n, j: (n, 0, j)),
        compiler_params=pltpu.CompilerParams(
            dimension_semantics=("parallel", "parallel")),
    )(x, w_big, b2, xl, xr)


def _conv_compat(x, w0, w1, w2, b2):
    N, Cp, L = x.shape
    w4 = jnp.concatenate([w1 + w2, w0, w0 + w1, w2], axis=0)            # (4Cp, Cp)
    ye, yo = pl.pallas_call(
        _upconv_compat_kernel,
        out_shape=(jax.ShapeDtypeStruct((N, Cp, L), x.dtype),) * 2,
        grid=(N,),
        in_specs=[pl.BlockSpec((1, Cp, L), lambda n: (n, 0, 0)),
                  pl.BlockSpec((4 * Cp, Cp), lambda n: (0, 0)),
                  pl.BlockSpec((Cp, 1), lambda n: (0, 0))],
        out_specs=(pl.BlockSpec((1, Cp, L), lambda n: (n, 0, 0)),) * 2,
        compiler_params=pltpu.CompilerParams(dimension_semantics=("parallel",)),
    )(x, w4, b2)
    return jnp.stack([ye, yo], axis=-1).reshape(N, Cp, 2 * L)


@functools.partial(jax.jit, static_argnames=("fused",))
def _forward_conv(x, weight, bias, fused):
    x = x.astype(jnp.float32)
    N, C, L = x.shape
    Cp = _round_up(C, 8)                     # pad channels so sublane slices are tile-aligned
    if Cp != C:
        x = jnp.pad(x, ((0, 0), (0, Cp - C), (0, 0)))
        weight = jnp.pad(weight, ((0, Cp - C), (0, Cp - C), (0, 0)))
        bias = jnp.pad(bias, (0, Cp - C))
    w0 = weight[:, :, 0].astype(jnp.float32)
    w1 = weight[:, :, 1].astype(jnp.float32)
    w2 = weight[:, :, 2].astype(jnp.float32)
    b2 = bias.reshape(Cp, 1).astype(jnp.float32)

    y = _conv_fused(x, w0, w1, w2, b2) if fused else _conv_compat(x, w0, w1, w2, b2)
    return y if Cp == C else y[:, :C, :]


@jax.jit
def _forward_noconv(x):
    N, C, L = x.shape
    NC = N * C
    x2 = x.reshape(NC, L)                    # free metadata reshape
    rb = NC if NC <= 512 else 512
    TL = _pick_tile(L, 1024)
    T = L // TL
    y2 = pl.pallas_call(
        _upsample_only_kernel,
        out_shape=jax.ShapeDtypeStruct((NC, 2 * L), x.dtype),
        grid=(pl.cdiv(NC, rb), T),
        in_specs=[pl.BlockSpec((rb, TL), lambda i, j: (i, j))],
        out_specs=pl.BlockSpec((rb, 2 * TL), lambda i, j: (i, j)),
        compiler_params=pltpu.CompilerParams(
            dimension_semantics=("parallel", "parallel")),
    )(x2)
    return y2.reshape(N, C, 2 * L)


# ------------------------------ reference ------------------------------------


def _reference(x, weight, bias, use_conv):
    x_up = jnp.repeat(x, 2, axis=-1)
    if not use_conv:
        return x_up
    y = jax.lax.conv_general_dilated(
        x_up, weight, window_strides=(1,), padding=((1, 1),),
        dimension_numbers=("NCH", "OIH", "NCH"))
    return y + bias.reshape(1, -1, 1)


# ------------------------------ dispatcher ------------------------------------

_FUSED_OK = None


def _fused_path_ok():
    """One-time toolchain feature probe: verifies the fused kernel (pltpu.roll + in-kernel
    even/odd interleave reshape) compiles and matches the XLA reference on a tiny problem.
    Falls back to the always-supported split-output variant otherwise."""
    global _FUSED_OK
    if _FUSED_OK is None:
        try:
            n, c, l = 1, 8, 16
            xp = jax.random.normal(jax.random.PRNGKey(123), (n, c, l), jnp.float32)
            wp = 0.25 * jax.random.normal(jax.random.PRNGKey(7), (c, c, 3), jnp.float32)
            bp = jnp.linspace(-1.0, 1.0, c, dtype=jnp.float32)
            got = jax.block_until_ready(_forward_conv(xp, wp, bp, fused=True))
            want = _reference(xp, wp, bp, True)
            _FUSED_OK = bool(jnp.allclose(got, want, rtol=2e-4, atol=2e-4))
        except Exception:
            _FUSED_OK = False
    return _FUSED_OK


def upsample_forward(x, weight, bias, use_conv):
    """x: (N, C, L) f32; weight: (C, C, 3) [out, in, k]; bias: (C,). Returns (N, C, 2L)."""
    if use_conv:
        return _forward_conv(x, weight, bias, fused=_fused_path_ok())
    if _fused_path_ok():
        return _forward_noconv(x)
    return jnp.repeat(x, 2, axis=-1)         # single-pass XLA fallback


# --------------------------------- main ---------------------------------------


if __name__ == "__main__":
    N, C, L = 2, 4, 16
    key = jax.random.PRNGKey(0)
    kx, kw, kb = jax.random.split(key, 3)

    x = jax.random.normal(kx, (N, C, L), dtype=jnp.float32)

    # nn.Conv1d default init: U(-1/sqrt(fan_in), 1/sqrt(fan_in)), fan_in = C * kernel_size.
    fan_in = C * 3
    bound = 1.0 / np.sqrt(fan_in)
    weight = jax.random.uniform(kw, (C, C, 3), jnp.float32, -bound, bound)   # (out, in, k)
    bias = jax.random.uniform(kb, (C,), jnp.float32, -bound, bound)

    # use_conv = True path
    out = jax.block_until_ready(upsample_forward(x, weight, bias, use_conv=True))
    ref = _reference(x, weight, bias, True)
    assert out.shape == (N, C, 2 * L)
    np.testing.assert_allclose(np.asarray(out), np.asarray(ref), rtol=1e-5, atol=1e-5)

    # use_conv = False path (pure nearest upsample)
    out2 = jax.block_until_ready(upsample_forward(x, weight, bias, use_conv=False))
    ref2 = _reference(x, weight, bias, False)
    np.testing.assert_allclose(np.asarray(out2), np.asarray(ref2), rtol=1e-6, atol=1e-6)

    print("KERNEL_OK")
</pallas_src>

<mosaic_0001>
module attributes {stable_mosaic.version = 11 : i64} {
  func.func @_upconv_fused_kernel(%arg0: i32, %arg1: i32, %arg2: memref<1x8x16xf32, #tpu.memory_space<vmem>>, %arg3: memref<16x24xf32, #tpu.memory_space<vmem>>, %arg4: memref<8x1xf32, #tpu.memory_space<vmem>>, %arg5: memref<1x1x8x1xf32, #tpu.memory_space<vmem>>, %arg6: memref<1x1x8x1xf32, #tpu.memory_space<vmem>>, %arg7: memref<1x8x32xf32, #tpu.memory_space<vmem>>) attributes {dimension_semantics = [#tpu.dimension_semantics<parallel>, #tpu.dimension_semantics<parallel>], iteration_bounds = array<i64: 1, 1>, scalar_prefetch = 0 : i64, scratch_operands = 0 : i64, tpu.core_type = #tpu.core_type<tc>, window_params = [{transform_indices = @transform_0, window_bounds = array<i64: 1, 8, 16>}, {pipeline_mode = #tpu.pipeline_mode<synchronous>, transform_indices = @transform_1, window_bounds = array<i64: 16, 24>}, {pipeline_mode = #tpu.pipeline_mode<synchronous>, transform_indices = @transform_2, window_bounds = array<i64: 8, 1>}, {transform_indices = @transform_3, window_bounds = array<i64: 1, 1, 8, 1>}, {transform_indices = @transform_4, window_bounds = array<i64: 1, 1, 8, 1>}, {transform_indices = @transform_5, window_bounds = array<i64: 1, 8, 32>}]} {
    %c0 = arith.constant 0 : index
    %c0_0 = arith.constant 0 : index
    %c0_1 = arith.constant 0 : index
    %0 = vector.load %arg2[%c0, %c0_0, %c0_1] : memref<1x8x16xf32, #tpu.memory_space<vmem>>, vector<1x8x16xf32>
    %1 = vector.shape_cast %0 : vector<1x8x16xf32> to vector<8x16xf32>
    %2 = tpu.iota {dimensions = array<i32: 1>} : vector<8x16xi32>
    %c0_i32 = arith.constant 0 : i32
    %3 = vector.broadcast %c0_i32 : i32 to vector<8x16xi32>
    %4 = arith.cmpi eq, %2, %3 : vector<8x16xi32>
    %c0_2 = arith.constant 0 : index
    %c0_3 = arith.constant 0 : index
    %c0_4 = arith.constant 0 : index
    %c0_5 = arith.constant 0 : index
    %5 = vector.load %arg5[%c0_2, %c0_3, %c0_4, %c0_5] : memref<1x1x8x1xf32, #tpu.memory_space<vmem>>, vector<1x1x8x1xf32>
    %6 = vector.shape_cast %5 : vector<1x1x8x1xf32> to vector<8x1xf32>
    %c1_i32 = arith.constant 1 : i32
    %7 = tpu.dynamic_rotate %1 by %c1_i32 dim 1 : vector<8x16xf32>, i32 -> vector<8x16xf32>
    %8 = vector.shape_cast %6 : vector<8x1xf32> to vector<8x1xf32>
    %9 = vector.broadcast %8 : vector<8x1xf32> to vector<8x16xf32>
    %10 = arith.select %4, %9, %7 : vector<8x16xi1>, vector<8x16xf32>
    %c15_i32 = arith.constant 15 : i32
    %11 = vector.broadcast %c15_i32 : i32 to vector<8x16xi32>
    %12 = arith.cmpi eq, %2, %11 : vector<8x16xi32>
    %c0_6 = arith.constant 0 : index
    %c0_7 = arith.constant 0 : index
    %c0_8 = arith.constant 0 : index
    %c0_9 = arith.constant 0 : index
    %13 = vector.load %arg6[%c0_6, %c0_7, %c0_8, %c0_9] : memref<1x1x8x1xf32, #tpu.memory_space<vmem>>, vector<1x1x8x1xf32>
    %14 = vector.shape_cast %13 : vector<1x1x8x1xf32> to vector<8x1xf32>
    %c15_i32_10 = arith.constant 15 : i32
    %15 = tpu.dynamic_rotate %1 by %c15_i32_10 dim 1 : vector<8x16xf32>, i32 -> vector<8x16xf32>
    %16 = vector.shape_cast %14 : vector<8x1xf32> to vector<8x1xf32>
    %17 = vector.broadcast %16 : vector<8x1xf32> to vector<8x16xf32>
    %18 = arith.select %12, %17, %15 : vector<8x16xi1>, vector<8x16xf32>
    %19 = tpu.concatenate %1, %10, %18 in 0 : vector<8x16xf32>, vector<8x16xf32>, vector<8x16xf32> -> vector<24x16xf32>
    %c0_11 = arith.constant 0 : index
    %c0_12 = arith.constant 0 : index
    %20 = vector.load %arg3[%c0_11, %c0_12] : memref<16x24xf32, #tpu.memory_space<vmem>>, vector<16x24xf32>
    %cst = arith.constant dense<0.000000e+00> : vector<16x16xf32>
    %21 = tpu.matmul %20, %19, %cst {dimension_numbers = #tpu.dot_dimension_numbers<[1], [0], [0], [1], [0, 0, 1, 1], [], []>} : vector<16x24xf32>, vector<24x16xf32>, vector<16x16xf32> -> vector<16x16xf32>
    %c0_13 = arith.constant 0 : index
    %c0_14 = arith.constant 0 : index
    %22 = vector.load %arg4[%c0_13, %c0_14] : memref<8x1xf32, #tpu.memory_space<vmem>>, vector<8x1xf32>
    %23 = vector.extract_strided_slice %21 {offsets = [0, 0], sizes = [8, 16], strides = [1, 1]} : vector<16x16xf32> to vector<8x16xf32>
    %24 = vector.broadcast %22 : vector<8x1xf32> to vector<8x16xf32>
    %25 = arith.addf %23, %24 : vector<8x16xf32>
    %26 = vector.extract_strided_slice %21 {offsets = [8, 0], sizes = [8, 16], strides = [1, 1]} : vector<16x16xf32> to vector<8x16xf32>
    %27 = vector.broadcast %22 : vector<8x1xf32> to vector<8x16xf32>
    %28 = arith.addf %26, %27 : vector<8x16xf32>
    %29 = vector.shape_cast %25 : vector<8x16xf32> to vector<8x16x1xf32>
    %30 = vector.shape_cast %28 : vector<8x16xf32> to vector<8x16x1xf32>
    %31 = tpu.concatenate %29, %30 in 2 : vector<8x16x1xf32>, vector<8x16x1xf32> -> vector<8x16x2xf32>
    %32 = vector.shape_cast %31 : vector<8x16x2xf32> to vector<8x32xf32>
    %c0_15 = arith.constant 0 : index
    %c0_16 = arith.constant 0 : index
    %c0_17 = arith.constant 0 : index
    %33 = vector.load %arg7[%c0_15, %c0_16, %c0_17] : memref<1x8x32xf32, #tpu.memory_space<vmem>>, vector<1x8x32xf32>
    %34 = vector.shape_cast %33 : vector<1x8x32xf32> to vector<8x32xf32>
    %35 = vector.shape_cast %32 : vector<8x32xf32> to vector<1x8x32xf32>
    tpu.vector_store %arg7[%c0_15, %c0_16, %c0_17], %35 {strides = array<i32>} : memref<1x8x32xf32, #tpu.memory_space<vmem>>, vector<1x8x32xf32>,
    return
  }
  func.func @transform_0(%arg0: i32, %arg1: i32) -> (i32, i32, i32) {
    %c0_i32 = arith.constant 0 : i32
    %c0_i32_0 = arith.constant 0 : i32
    return %arg0, %c0_i32, %arg1 : i32, i32, i32
  }
  func.func @transform_1(%arg0: i32, %arg1: i32) -> (i32, i32) {
    %c0_i32 = arith.constant 0 : i32
    %c0_i32_0 = arith.constant 0 : i32
    %c0_i32_1 = arith.constant 0 : i32
    return %c0_i32, %c0_i32_0 : i32, i32
  }
  func.func @transform_2(%arg0: i32, %arg1: i32) -> (i32, i32) {
    %c0_i32 = arith.constant 0 : i32
    %c0_i32_0 = arith.constant 0 : i32
    %c0_i32_1 = arith.constant 0 : i32
    return %c0_i32, %c0_i32_0 : i32, i32
  }
  func.func @transform_3(%arg0: i32, %arg1: i32) -> (i32, i32, i32, i32) {
    %c0_i32 = arith.constant 0 : i32
    %c0_i32_0 = arith.constant 0 : i32
    %c0_i32_1 = arith.constant 0 : i32
    return %arg0, %arg1, %c0_i32, %c0_i32_0 : i32, i32, i32, i32
  }
  func.func @transform_4(%arg0: i32, %arg1: i32) -> (i32, i32, i32, i32) {
    %c0_i32 = arith.constant 0 : i32
    %c0_i32_0 = arith.constant 0 : i32
    %c0_i32_1 = arith.constant 0 : i32
    return %arg0, %arg1, %c0_i32, %c0_i32_0 : i32, i32, i32, i32
  }
  func.func @transform_5(%arg0: i32, %arg1: i32) -> (i32, i32, i32) {
    %c0_i32 = arith.constant 0 : i32
    %c0_i32_0 = arith.constant 0 : i32
    return %arg0, %c0_i32, %arg1 : i32, i32, i32
  }
}

module attributes {stable_mosaic.version = 11 : i64} {
  func.func @_upconv_compat_kernel(%arg0: i32, %arg1: memref<1x8x16xf32, #tpu.memory_space<vmem>>, %arg2: memref<32x8xf32, #tpu.memory_space<vmem>>, %arg3: memref<8x1xf32, #tpu.memory_space<vmem>>, %arg4: memref<1x8x16xf32, #tpu.memory_space<vmem>>, %arg5: memref<1x8x16xf32, #tpu.memory_space<vmem>>) attributes {dimension_semantics = [#tpu.dimension_semantics<parallel>], iteration_bounds = array<i64: 2>, scalar_prefetch = 0 : i64, scratch_operands = 0 : i64, tpu.core_type = #tpu.core_type<tc>, window_params = [{transform_indices = @transform_0, window_bounds = array<i64: 1, 8, 16>}, {pipeline_mode = #tpu.pipeline_mode<synchronous>, transform_indices = @transform_1, window_bounds = array<i64: 32, 8>}, {pipeline_mode = #tpu.pipeline_mode<synchronous>, transform_indices = @transform_2, window_bounds = array<i64: 8, 1>}, {transform_indices = @transform_3, window_bounds = array<i64: 1, 8, 16>}, {transform_indices = @transform_4, window_bounds = array<i64: 1, 8, 16>}]} {
    %c0 = arith.constant 0 : index
    %c0_0 = arith.constant 0 : index
    %c0_1 = arith.constant 0 : index
    %0 = vector.load %arg1[%c0, %c0_0, %c0_1] : memref<1x8x16xf32, #tpu.memory_space<vmem>>, vector<1x8x16xf32>
    %1 = vector.shape_cast %0 : vector<1x8x16xf32> to vector<8x16xf32>
    %c0_2 = arith.constant 0 : index
    %c0_3 = arith.constant 0 : index
    %2 = vector.load %arg2[%c0_2, %c0_3] : memref<32x8xf32, #tpu.memory_space<vmem>>, vector<32x8xf32>
    %cst = arith.constant dense<0.000000e+00> : vector<32x16xf32>
    %3 = tpu.matmul %2, %1, %cst {dimension_numbers = #tpu.dot_dimension_numbers<[1], [0], [0], [1], [0, 0, 1, 1], [], []>} : vector<32x8xf32>, vector<8x16xf32>, vector<32x16xf32> -> vector<32x16xf32>
    %4 = vector.extract_strided_slice %3 {offsets = [0, 0], sizes = [8, 16], strides = [1, 1]} : vector<32x16xf32> to vector<8x16xf32>
    %5 = vector.extract_strided_slice %3 {offsets = [8, 0], sizes = [8, 16], strides = [1, 1]} : vector<32x16xf32> to vector<8x16xf32>
    %6 = vector.extract_strided_slice %3 {offsets = [16, 0], sizes = [8, 16], strides = [1, 1]} : vector<32x16xf32> to vector<8x16xf32>
    %7 = vector.extract_strided_slice %3 {offsets = [24, 0], sizes = [8, 16], strides = [1, 1]} : vector<32x16xf32> to vector<8x16xf32>
    %cst_4 = arith.constant 0.000000e+00 : f32
    %8 = vector.broadcast %cst_4 : f32 to vector<8x1xf32>
    %9 = vector.extract_strided_slice %5 {offsets = [0, 0], sizes = [8, 15], strides = [1, 1]} : vector<8x16xf32> to vector<8x15xf32>
    %10 = tpu.concatenate %8, %9 in 1 : vector<8x1xf32>, vector<8x15xf32> -> vector<8x16xf32>
    %11 = vector.extract_strided_slice %7 {offsets = [0, 1], sizes = [8, 15], strides = [1, 1]} : vector<8x16xf32> to vector<8x15xf32>
    %12 = tpu.concatenate %11, %8 in 1 : vector<8x15xf32>, vector<8x1xf32> -> vector<8x16xf32>
    %c0_5 = arith.constant 0 : index
    %c0_6 = arith.constant 0 : index
    %13 = vector.load %arg3[%c0_5, %c0_6] : memref<8x1xf32, #tpu.memory_space<vmem>>, vector<8x1xf32>
    %14 = arith.addf %4, %10 : vector<8x16xf32>
    %15 = vector.broadcast %13 : vector<8x1xf32> to vector<8x16xf32>
    %16 = arith.addf %14, %15 : vector<8x16xf32>
    %c0_7 = arith.constant 0 : index
    %c0_8 = arith.constant 0 : index
    %c0_9 = arith.constant 0 : index
    %17 = vector.load %arg4[%c0_7, %c0_8, %c0_9] : memref<1x8x16xf32, #tpu.memory_space<vmem>>, vector<1x8x16xf32>
    %18 = vector.shape_cast %17 : vector<1x8x16xf32> to vector<8x16xf32>
    %19 = vector.shape_cast %16 : vector<8x16xf32> to vector<1x8x16xf32>
    tpu.vector_store %arg4[%c0_7, %c0_8, %c0_9], %19 {strides = array<i32>} : memref<1x8x16xf32, #tpu.memory_space<vmem>>, vector<1x8x16xf32>,
    %20 = arith.addf %6, %12 : vector<8x16xf32>
    %21 = vector.broadcast %13 : vector<8x1xf32> to vector<8x16xf32>
    %22 = arith.addf %20, %21 : vector<8x16xf32>
    %c0_10 = arith.constant 0 : index
    %c0_11 = arith.constant 0 : index
    %c0_12 = arith.constant 0 : index
    %23 = vector.load %arg5[%c0_10, %c0_11, %c0_12] : memref<1x8x16xf32, #tpu.memory_space<vmem>>, vector<1x8x16xf32>
    %24 = vector.shape_cast %23 : vector<1x8x16xf32> to vector<8x16xf32>
    %25 = vector.shape_cast %22 : vector<8x16xf32> to vector<1x8x16xf32>
    tpu.vector_store %arg5[%c0_10, %c0_11, %c0_12], %25 {strides = array<i32>} : memref<1x8x16xf32, #tpu.memory_space<vmem>>, vector<1x8x16xf32>,
    return
  }
  func.func @transform_0(%arg0: i32) -> (i32, i32, i32) {
    %c0_i32 = arith.constant 0 : i32
    %c0_i32_0 = arith.constant 0 : i32
    %c0_i32_1 = arith.constant 0 : i32
    return %arg0, %c0_i32, %c0_i32_0 : i32, i32, i32
  }
  func.func @transform_1(%arg0: i32) -> (i32, i32) {
    %c0_i32 = arith.constant 0 : i32
    %c0_i32_0 = arith.constant 0 : i32
    %c0_i32_1 = arith.constant 0 : i32
    return %c0_i32, %c0_i32_0 : i32, i32
  }
  func.func @transform_2(%arg0: i32) -> (i32, i32) {
    %c0_i32 = arith.constant 0 : i32
    %c0_i32_0 = arith.constant 0 : i32
    %c0_i32_1 = arith.constant 0 : i32
    return %c0_i32, %c0_i32_0 : i32, i32
  }
  func.func @transform_3(%arg0: i32) -> (i32, i32, i32) {
    %c0_i32 = arith.constant 0 : i32
    %c0_i32_0 = arith.constant 0 : i32
    %c0_i32_1 = arith.constant 0 : i32
    return %arg0, %c0_i32, %c0_i32_0 : i32, i32, i32
  }
  func.func @transform_4(%arg0: i32) -> (i32, i32, i32) {
    %c0_i32 = arith.constant 0 : i32
    %c0_i32_0 = arith.constant 0 : i32
    %c0_i32_1 = arith.constant 0 : i32
    return %arg0, %c0_i32, %c0_i32_0 : i32, i32, i32
  }
}

</mosaic_0001>

<bundles_post_ra>
// kernel: _forward_conv.1
= control target key start
LH: loop header
LB: loop body
LE: loop exit
PB: predicated region body
PF: predicated region fallthrough
CT: control target
= control target key end

     0   :  { %s783_s22 = smov 16   ;;  %v784_v2 = vmov 0   ;;  %s966_s0 = inlined_call_operand.vmem [shape: f32[1,8,16], index: 0, kind: input, shape index: {}]   ;;  %s967_s1 = inlined_call_operand.vmem [shape: f32[16,24], index: 1, kind: input, shape index: {}]   ;;  %s968_s2 = inlined_call_operand.vmem [shape: f32[8,1], index: 2, kind: input, shape index: {}]   ;;  %s969_s3 = inlined_call_operand.vmem [shape: f32[1,1,8,1], index: 3, kind: input, shape index: {}, may-alias: {3,4}]   ;;  %s970_s4 = inlined_call_operand.vmem [shape: f32[1,1,8,1], index: 4, kind: input, shape index: {}, may-alias: {3,4}]   ;;  %s971_s5 = inlined_call_operand.hbm [shape: f32[1,8,32], index: 5, kind: output, shape index: {}]  }
   0x1   :  { %v21_v0 = vld [vmem:[%s966_s0] sm:$0xff]  ;;  %757 = vset.pattern.permute.xlu1 %v784_v2 }
   0x2   :  { %v25_v1 = vld [vmem:[%s969_s3] sm:$0xff]  ;;  %27 = vrot.lane.b32.xlu0 %v21_v0, %s783_s22 }
   0x3   :  { %10 = vsyncpa [#allocation3], 0  ;;  %35 = vperm.xlu1 %757, %v25_v1   ;;  %758 = vset.pattern.permute.xlu0 %v784_v2  ;;  %v44_v3 = vld [vmem:[%s970_s4] sm:$0xff]  ;;  %vm26_vm0 = vcmask 1047680   ;;  %vm56_vm1 = vcmask 195584   ;;  %s785_s25 = smov 127   ;;  %v22_v11 = vlaneseq }
   0x4   :  { %v54_v6 = vld [vmem:[%s967_s1] sm:$0xff]  ;;  %s786_s26 = smov 113   ;;  %v55_v19 = vld [vmem:[%s967_s1 + $0x8] sm:$0xff]  ;;  %vm322_vm4 = vcmask 7168   ;;  %s789_s1 = smov 4   ;;  %vm671_vm5 = vcmask 15360  }
   0x5   :  { %729 = vmatprep.mubr.msk.f32.mxu0 %vm56_vm1, %v54_v6  ;;  %v138_v9 = vld [vmem:[%s968_s2] sm:$0xff]  ;;  %v23_v12 = vand.u32 127, %v22_v11  ;;  %v856_v20 = vshrl.u32 %v22_v11, 7  ;;  %s790_s2 = smov 2   ;;  %s791_s30 = smov 8   ;;  %vm673_vm6 = vcmask 31744  }
   0x6   :  { %s792_s6 = smov 6   ;;  %s793_s7 = smov 12   ;;  %vm675_vm7 = vcmask 48128   ;;  %vm677_vm8 = vcmask 64512   ;;  %vm679_vm9 = vcmask 80896   ;;  %vm681_vm10 = vcmask 97280  }
   0x7   :  { %47 = vperm.xlu1 %757, %v44_v3   ;;  %vm24_vm2 = vcmp.eq.s32.totalorder %v23_v12, 0  ;;  %vm43_vm3 = vcmp.eq.s32.totalorder %v23_v12, 15  ;;  %v159_v22 = vsub.s32 1, %v856_v20  ;;  %v148_v23 = vsub.s32 0, %v856_v20  ;;  %s794_s8 = smov 10   ;;  %s795_s9 = smov 14  }
   0x8   :  { %v181_v29 = vsub.s32 3, %v856_v20  ;;  %v170_v30 = vsub.s32 2, %v856_v20  ;;  %v203_v33 = vsub.s32 5, %v856_v20  ;;  %v192_v34 = vsub.s32 4, %v856_v20  ;;  %s796_s10 = smov 18   ;;  %s797_s11 = smov 22  }
   0x9   :  { %v225_v37 = vsub.s32 7, %v856_v20  ;;  %v214_v38 = vsub.s32 6, %v856_v20  ;;  %s798_s12 = smov 20   ;;  %s799_s13 = smov 26   ;;  %vm683_vm11 = vcmask 113664   ;;  %vm685_vm12 = vcmask 130048  }
   0xa   :  { %s800_s14 = smov 24   ;;  %s801_s15 = smov 30   ;;  %vm687_vm13 = vcmask 146432   ;;  %vm689_vm14 = vcmask 162816   ;;  %vm691_vm15 = vcmask 179200  }
   0xb   :  { %s802_s16 = smov 28   ;;  %s803_s17 = smov [#allocation2]  }
   0xc   :  { %s708_s18 = sshll.u32 %s803_s17, 4  ;;  %s709_s18 = int_to_ptr.vmem [resolvable:$true] %s708_s18 }
   0xd   :  { %s759_s19 = scalar_lea.vmem %s709_s18, 128  ;;  %p764_p1 = scmp.lt.s32.totalorder %s709_s18, %s709_s18 }
   0xe   :  { %p760_p0 = scmp.ne.s32.totalorder %s709_s18, %s759_s19  ;;  %p765_p2 = scmp.lt.s32.totalorder %s759_s19, %s759_s19 }
  0x10   :  { %p766_p3 = por %p765_p2, %p764_p1 }
  0x12   :  { %p767_p4 = pnand %p766_p3, %p760_p0 }
  0x74   :  { %v28_v4 = vpop.permute.xlu0 %27 }
  0x75   :  { %v29_v5 = vsel %vm26_vm0, %v28_v4, %v21_v0  ;;  %v787_v4 = vmov 1983009808  }
  0x76   :  { %30 = vrot.lane.b32.xlu0 %v29_v5, %s783_s22  ;;  %v342_v5 = vunpack.c.l.s4 %v787_v4 }
  0x82   :  { %v36_v10 = vpop.permute.xlu1 %35 }
  0x86   :  { %v48_v13 = vpop.permute.xlu1 %47 }
  0xe8   :  { %v31_v7 = vpop.permute.xlu0 %30 }
  0xe9   :  { %v32_v8 = vsel %vm26_vm0, %v31_v7, %v21_v0  ;;  %vm694_vm0 = vcmask 211968  }
  0xea   :  { %50 = vrot.lane.b32.xlu1 %v32_v8, %s785_s25  ;;  %39 = vrot.lane.b32.xlu0 %v32_v8, %s786_s26 }
  0xee   :  { %141 = vperm.xlu0 %758, %v138_v9   ;;  %v343_v9 = vunpack.c.0.s8 %v342_v5 }
 0x15c   :  { %v40_v14 = vpop.permute.xlu0 %39  ;;  %v51_v16 = vpop.permute.xlu1 %50 }
 0x15d   :  { %v42_v15 = vsel %vm24_vm2, %v36_v10, %v40_v14  ;;  %v53_v18 = vsel %vm43_vm3, %v48_v13, %v51_v16  ;;  %v788_v10 = vmov 1934713408   ;;  %vm696_vm2 = vcmask 228352  }
 0x15e   :  { %v732_v17 = vpack.c.bf16 %v42_v15, %v21_v0  ;;  %v406_v11 = vunpack.c.l.s4 %v788_v10  ;;  %vm698_vm3 = vcmask 244736  }
 0x160   :  { %733 = vmatprep.subr.bf16.mxu0 %v732_v17 }
 0x161   :  { %735 = vmatpush3.bf16.msra.mxu0 %v732_v17 }
 0x162   :  { %727 = vmatprep.subr.mxu0 %v53_v18 }
 0x165   :  { %728 = vmatpush3.msra.mxu0 %v53_v18 }
 0x166   :  { %730 = vmatmul.mubr.msk.f32.vlgmr.msra.gmra.mrb[0].mxu0 %vm56_vm1, %v55_v19  ;;  %v886_v19 = vsub.s32 %v343_v9, %v856_v20 }
 0x16d   :  { %v142_v21 = vpop.permute.xlu0 %141 }
 0x239   :  { %v731_v24 = vpop.f32.mrb[0].mxu0 }
 0x23a   :  { %v145_v25 = vadd.f32 %v731_v24, %v142_v21  ;;  %v129_v26 = vpop.f32.mrb[1].mxu0 }
 0x23b   :  { %v144_v41 = vadd.f32 %v142_v21, %v129_v26 }
 0x23c   :  { %v248_v27 = vrot.slane %v145_v25, %v159_v22  ;;  %v237_v28 = vrot.slane %v145_v25, %v148_v23  ;;  %v270_v31 = vrot.slane %v145_v25, %v181_v29  ;;  %v259_v32 = vrot.slane %v145_v25, %v170_v30 }
 0x23d   :  { %v292_v35 = vrot.slane %v145_v25, %v203_v33  ;;  %v281_v36 = vrot.slane %v145_v25, %v192_v34  ;;  %v314_v39 = vrot.slane %v145_v25, %v225_v37  ;;  %v303_v40 = vrot.slane %v145_v25, %v214_v38 }
 0x23e   :  { %250 = vbcast.lane.b32.xlu1 %v248_v27, 256  ;;  %239 = vbcast.lane.b32.xlu0 %v237_v28, 256  ;;  %v171_v42 = vrot.slane %v144_v41, %v170_v30  ;;  %v149_v43 = vrot.slane %v144_v41, %v148_v23  ;;  %v193_v44 = vrot.slane %v144_v41, %v192_v34  ;;  %v407_v23 = vunpack.c.0.s8 %v406_v11 }
 0x23f   :  { %v160_v45 = vrot.slane %v144_v41, %v159_v22  ;;  %v215_v46 = vrot.slane %v144_v41, %v214_v38  ;;  %v182_v47 = vrot.slane %v144_v41, %v181_v29  ;;  %v204_v48 = vrot.slane %v144_v41, %v203_v33 }
 0x240   :  { %v226_v49 = vrot.slane %v144_v41, %v225_v37 }
 0x242   :  { %272 = vbcast.lane.b32.xlu1 %v270_v31, 256  ;;  %261 = vbcast.lane.b32.xlu0 %v259_v32, 256 }
 0x246   :  { %294 = vbcast.lane.b32.xlu1 %v292_v35, 256  ;;  %283 = vbcast.lane.b32.xlu0 %v281_v36, 256 }
 0x24a   :  { %316 = vbcast.lane.b32.xlu1 %v314_v39, 256  ;;  %305 = vbcast.lane.b32.xlu0 %v303_v40, 256 }
 0x24e   :  { %254 = vbcast.lane.b32.xlu1 %v248_v27, 264  ;;  %243 = vbcast.lane.b32.xlu0 %v237_v28, 264 }
 0x252   :  { %276 = vbcast.lane.b32.xlu1 %v270_v31, 264  ;;  %265 = vbcast.lane.b32.xlu0 %v259_v32, 264 }
 0x256   :  { %298 = vbcast.lane.b32.xlu1 %v292_v35, 264  ;;  %287 = vbcast.lane.b32.xlu0 %v281_v36, 264  ;;  %v894_v36 = vsub.s32 %v407_v23, %v856_v20 }
 0x25a   :  { %173 = vbcast.lane.b32.xlu0 %v171_v42, 256  ;;  %151 = vbcast.lane.b32.xlu1 %v149_v43, 256 }
 0x25e   :  { %195 = vbcast.lane.b32.xlu0 %v193_v44, 256  ;;  %162 = vbcast.lane.b32.xlu1 %v160_v45, 256 }
 0x262   :  { %217 = vbcast.lane.b32.xlu0 %v215_v46, 256  ;;  %184 = vbcast.lane.b32.xlu1 %v182_v47, 256 }
 0x266   :  { %155 = vbcast.lane.b32.xlu0 %v149_v43, 264  ;;  %206 = vbcast.lane.b32.xlu1 %v204_v48, 256 }
 0x26a   :  { %177 = vbcast.lane.b32.xlu0 %v171_v42, 264  ;;  %228 = vbcast.lane.b32.xlu1 %v226_v49, 256 }
 0x26e   :  { %199 = vbcast.lane.b32.xlu0 %v193_v44, 264  ;;  %166 = vbcast.lane.b32.xlu1 %v160_v45, 264 }
 0x272   :  { %221 = vbcast.lane.b32.xlu0 %v215_v46, 264  ;;  %188 = vbcast.lane.b32.xlu1 %v182_v47, 264 }
 0x276   :  { %309 = vbcast.lane.b32.xlu0 %v303_v40, 264  ;;  %210 = vbcast.lane.b32.xlu1 %v204_v48, 264 }
 0x27a   :  { %232 = vbcast.lane.b32.xlu1 %v226_v49, 264 }
 0x27e   :  { %320 = vbcast.lane.b32.xlu1 %v314_v39, 264 }
 0x2b0   :  { %v251_v50 = vpop.permute.xlu1 %250  ;;  %v240_v51 = vpop.permute.xlu0 %239 }
 0x2b4   :  { %v273_v52 = vpop.permute.xlu1 %272  ;;  %v262_v53 = vpop.permute.xlu0 %261 }
 0x2b8   :  { %v295_v54 = vpop.permute.xlu1 %294  ;;  %v284_v55 = vpop.permute.xlu0 %283 }
 0x2bc   :  { %v317_v56 = vpop.permute.xlu1 %316  ;;  %v306_v57 = vpop.permute.xlu0 %305 }
 0x2c0   :  { %v866_v58 = vpop.permute.xlu1 %254  ;;  %v868_v59 = vpop.permute.xlu0 %243 }
 0x2c4   :  { %v870_v60 = vpop.permute.xlu1 %276  ;;  %v872_v61 = vpop.permute.xlu0 %265 }
 0x2c8   :  { %v874_v62 = vpop.permute.xlu1 %298  ;;  %v876_v63 = vpop.permute.xlu0 %287 }
 0x2cc   :  { %v174_v0 = vpop.permute.xlu0 %173  ;;  %v152_v1 = vpop.permute.xlu1 %151 }
 0x2cd   :  { %v327_v12 = vsel %vm322_vm4, %v174_v0, %v262_v53  ;;  %v323_v13 = vsel %vm322_vm4, %v152_v1, %v240_v51 }
 0x2ce   :  { %v339_v21 = vcombine.low %v323_v13, %v327_v12  ;;  %v340_v30 = vcombine.high %v323_v13, %v327_v12 }
 0x2d0   :  { %v196_v2 = vpop.permute.xlu0 %195  ;;  %v163_v3 = vpop.permute.xlu1 %162  ;;  %v347_v33 = vrot.slane %v339_v21, %v886_v19  ;;  %v354_v46 = vrot.slane %v340_v30, %v886_v19 }
 0x2d1   :  { %v325_v14 = vsel %vm322_vm4, %v163_v3, %v251_v50  ;;  %v331_v22 = vsel %vm322_vm4, %v196_v2, %v284_v55 }
 0x2d4   :  { %v218_v6 = vpop.permute.xlu0 %217  ;;  %v185_v7 = vpop.permute.xlu1 %184 }
 0x2d5   :  { %v329_v8 = vsel %vm322_vm4, %v185_v7, %v273_v52  ;;  %v335_v15 = vsel %vm322_vm4, %v218_v6, %v306_v57 }
 0x2d6   :  { %v355_v16 = vcombine.low %v325_v14, %v329_v8  ;;  %v371_v24 = vcombine.low %v331_v22, %v335_v15  ;;  %v372_v25 = vcombine.high %v331_v22, %v335_v15  ;;  %v356_v26 = vcombine.high %v325_v14, %v329_v8 }
 0x2d8   :  { %v883_v17 = vpop.permute.xlu0 %155  ;;  %v207_v18 = vpop.permute.xlu1 %206  ;;  %v363_v27 = vrot.slane %v355_v16, %v886_v19  ;;  %v379_v37 = vrot.slane %v371_v24, %v886_v19  ;;  %v386_v38 = vrot.slane %v372_v25, %v886_v19  ;;  %v370_v39 = vrot.slane %v356_v26, %v886_v19 }
 0x2d9   :  { %v333_v31 = vsel %vm322_vm4, %v207_v18, %v295_v54  ;;  %v324_v15 = vsel %vm322_vm4, %v883_v17, %v868_v59 }
 0x2da   :  { %v403_v40 = vcombine.low %v347_v33, %v363_v27  ;;  %v404_v41 = vcombine.high %v347_v33, %v363_v27  ;;  %v419_v49 = vcombine.low %v354_v46, %v370_v39  ;;  %v420_v2 = vcombine.high %v354_v46, %v370_v39 }
 0x2dc   :  { %v178_v28 = vpop.permute.xlu0 %177  ;;  %v229_v29 = vpop.permute.xlu1 %228  ;;  %v418_v52 = vrot.slane %v404_v41, %v894_v36  ;;  %v905_v54 = vrot.slane %v403_v40, %v894_v36  ;;  %v427_v4 = vrot.slane %v419_v49, %v894_v36  ;;  %v434_v14 = vrot.slane %v420_v2, %v894_v36 }
 0x2dd   :  { %v337_v32 = vsel %vm322_vm4, %v229_v29, %v317_v56  ;;  %v328_v11 = vsel %vm322_vm4, %v178_v28, %v872_v61 }
 0x2de   :  { %v387_v34 = vcombine.low %v333_v31, %v337_v32  ;;  %v388_v35 = vcombine.high %v333_v31, %v337_v32  ;;  %v475_v18 = vcombine.low %v324_v15, %v328_v11  ;;  %v476_v33 = vcombine.high %v324_v15, %v328_v11 }
 0x2e0   :  { %v395_v42 = vrot.slane %v387_v34, %v886_v19  ;;  %v402_v43 = vrot.slane %v388_v35, %v886_v19  ;;  %v200_v44 = vpop.permute.xlu0 %199  ;;  %v167_v45 = vpop.permute.xlu1 %166  ;;  %v483_v17 = vrot.slane %v475_v18, %v886_v19 }
 0x2e1   :  { %v326_v12 = vsel %vm322_vm4, %v167_v45, %v866_v58  ;;  %v332_v58 = vsel %vm322_vm4, %v200_v44, %v876_v63 }
 0x2e2   :  { %v435_v47 = vcombine.low %v379_v37, %v395_v42  ;;  %v436_v48 = vcombine.high %v379_v37, %v395_v42  ;;  %v451_v20 = vcombine.low %v386_v38, %v402_v43  ;;  %v452_v56 = vcombine.high %v386_v38, %v402_v43 }
 0x2e3   :  { %v490_v42 = vrot.slane %v476_v33, %v886_v19 }
 0x2e4   :  { %v222_v50 = vpop.permute.xlu0 %221  ;;  %v189_v51 = vpop.permute.xlu1 %188  ;;  %v450_v53 = vrot.slane %v436_v48, %v894_v36  ;;  %v908_v55 = vrot.slane %v435_v47, %v894_v36  ;;  %v459_v1 = vrot.slane %v451_v20, %v894_v36  ;;  %v466_v10 = vrot.slane %v452_v56, %v894_v36 }
 0x2e5   :  { %v330_v5 = vsel %vm322_vm4, %v189_v51, %v870_v60 }
 0x2e6   :  { %v469_v57 = vcombine.low %v418_v52, %v450_v53  ;;  %v468_v0 = vcombine.high %v905_v54, %v908_v55  ;;  %v467_v6 = vcombine.low %v905_v54, %v908_v55  ;;  %v471_v8 = vcombine.low %v427_v4, %v459_v1 }
 0x2e7   :  { %v470_v9 = vcombine.high %v418_v52, %v450_v53  ;;  %v491_v13 = vcombine.low %v326_v12, %v330_v5  ;;  %v473_v21 = vcombine.low %v434_v14, %v466_v10  ;;  %v472_v61 = vcombine.high %v427_v4, %v459_v1 }
 0x2e8   :  { %616 = vrot.lane.b32.xlu1 %v469_v57, %s789_s1  ;;  %612 = vrot.lane.b32.xlu0 %v468_v0, %s790_s2  ;;  %v211_v3 = vpop.permute.xlu1 %210  ;;  %v310_v7 = vpop.permute.xlu0 %309  ;;  %v474_v28 = vcombine.high %v434_v14, %v466_v10  ;;  %v492_v29 = vcombine.high %v326_v12, %v330_v5 }
 0x2e9   :  { %v336_v16 = vsel %vm322_vm4, %v222_v50, %v310_v7  ;;  %v499_v22 = vrot.slane %v491_v13, %v886_v19  ;;  %v334_v25 = vsel %vm322_vm4, %v211_v3, %v874_v62 }
 0x2ea   :  { %v507_v23 = vcombine.low %v332_v58, %v336_v16  ;;  %v508_v30 = vcombine.high %v332_v58, %v336_v16  ;;  %v506_v37 = vrot.slane %v492_v29, %v886_v19 }
 0x2eb   :  { %v539_v63 = vcombine.low %v483_v17, %v499_v22  ;;  %v540_v38 = vcombine.high %v483_v17, %v499_v22 }
 0x2ec   :  { %624 = vrot.lane.b32.xlu1 %v471_v8, %s791_s30  ;;  %620 = vrot.lane.b32.xlu0 %v470_v9, %s792_s6  ;;  %v233_v60 = vpop.permute.xlu1 %232  ;;  %v515_v31 = vrot.slane %v507_v23, %v886_v19  ;;  %v522_v39 = vrot.slane %v508_v30, %v886_v19  ;;  %v555_v47 = vcombine.low %v490_v42, %v506_v37 }
 0x2ed   :  { %v547_v40 = vrot.slane %v539_v63, %v894_v36  ;;  %v554_v48 = vrot.slane %v540_v38, %v894_v36  ;;  %v556_v52 = vcombine.high %v490_v42, %v506_v37 }
 0x2ef   :  { %v570_v0 = vrot.slane %v556_v52, %v894_v36 }
 0x2f0   :  { %632 = vrot.lane.b32.xlu1 %v473_v21, %s793_s7  ;;  %628 = vrot.lane.b32.xlu0 %v472_v61, %s794_s8  ;;  %v321_v24 = vpop.permute.xlu1 %320 }
 0x2f1   :  { %v338_v59 = vsel %vm322_vm4, %v233_v60, %v321_v24  ;;  %vm700_vm4 = vcmask 261120  }
 0x2f2   :  { %v523_v26 = vcombine.low %v334_v25, %v338_v59  ;;  %v524_v27 = vcombine.high %v334_v25, %v338_v59 }
 0x2f4   :  { %v531_v32 = vrot.slane %v523_v26, %v886_v19  ;;  %636 = vrot.lane.b32.xlu0 %v474_v28, %s795_s9  ;;  %v538_v34 = vrot.slane %v524_v27, %v886_v19  ;;  %v563_v19 = vrot.slane %v555_v47, %v894_v36 }
 0x2f6   :  { %v571_v62 = vcombine.low %v515_v31, %v531_v32  ;;  %v572_v35 = vcombine.high %v515_v31, %v531_v32  ;;  %v587_v43 = vcombine.low %v522_v39, %v538_v34  ;;  %v588_v20 = vcombine.high %v522_v39, %v538_v34 }
 0x2f8   :  { %v579_v41 = vrot.slane %v571_v62, %v894_v36  ;;  %v586_v46 = vrot.slane %v572_v35, %v894_v36  ;;  %v595_v51 = vrot.slane %v587_v43, %v894_v36  ;;  %v602_v57 = vrot.slane %v588_v20, %v894_v36 }
 0x2fa   :  { %v604_v44 = vcombine.high %v547_v40, %v579_v41  ;;  %v603_v45 = vcombine.low %v547_v40, %v579_v41  ;;  %v606_v49 = vcombine.high %v554_v48, %v586_v46  ;;  %v605_v50 = vcombine.low %v554_v48, %v586_v46 }
 0x2fb   :  { %v608_v53 = vcombine.high %v563_v19, %v595_v51  ;;  %v607_v56 = vcombine.low %v563_v19, %v595_v51  ;;  %v610_v1 = vcombine.high %v570_v0, %v602_v57  ;;  %v609_v2 = vcombine.low %v570_v0, %v602_v57 }
 0x2fc   :  { %644 = vrot.lane.b32.xlu0 %v604_v44, %s796_s10  ;;  %640 = vrot.lane.b32.xlu1 %v603_v45, %s783_s22 }
 0x300   :  { %652 = vrot.lane.b32.xlu0 %v606_v49, %s797_s11  ;;  %648 = vrot.lane.b32.xlu1 %v605_v50, %s798_s12 }
 0x304   :  { %660 = vrot.lane.b32.xlu0 %v608_v53, %s799_s13  ;;  %656 = vrot.lane.b32.xlu1 %v607_v56, %s800_s14 }
 0x308   :  { %668 = vrot.lane.b32.xlu0 %v610_v1, %s801_s15  ;;  %664 = vrot.lane.b32.xlu1 %v609_v2, %s802_s16 }
 0x35a   :  { %v613_v3 = vpop.permute.xlu0 %612  ;;  %v617_v4 = vpop.permute.xlu1 %616 }
 0x35b   :  { %v672_v7 = vsel %vm671_vm5, %v467_v6, %v613_v3 }
 0x35c   :  { %v674_v10 = vsel %vm673_vm6, %v672_v7, %v617_v4 }
 0x35e   :  { %v621_v5 = vpop.permute.xlu0 %620  ;;  %v625_v8 = vpop.permute.xlu1 %624 }
 0x35f   :  { %v676_v36 = vsel %vm675_vm7, %v674_v10, %v621_v5 }
 0x360   :  { %v678_v11 = vsel %vm677_vm8, %v676_v36, %v625_v8 }
 0x362   :  { %v629_v9 = vpop.permute.xlu0 %628  ;;  %v633_v13 = vpop.permute.xlu1 %632 }
 0x363   :  { %v680_v12 = vsel %vm679_vm9, %v678_v11, %v629_v9 }
 0x364   :  { %v682_v14 = vsel %vm681_vm10, %v680_v12, %v633_v13 }
 0x366   :  { %v637_v60 = vpop.permute.xlu0 %636 }
 0x367   :  { %v684_v15 = vsel %vm683_vm11, %v682_v14, %v637_v60 }
 0x36e   :  { %v645_v16 = vpop.permute.xlu0 %644  ;;  %v641_v54 = vpop.permute.xlu1 %640 }
 0x36f   :  { %v686_v55 = vsel %vm685_vm12, %v684_v15, %v641_v54 }
 0x370   :  { %v688_v18 = vsel %vm687_vm13, %v686_v55, %v645_v16 }
 0x372   :  { %v653_v6 = vpop.permute.xlu0 %652  ;;  %v649_v21 = vpop.permute.xlu1 %648 }
 0x373   :  { %v690_v61 = vsel %vm689_vm14, %v688_v18, %v649_v21 }
 0x374   :  { %v692_v22 = vsel %vm691_vm15, %v690_v61, %v653_v6 }
 0x376   :  { %v661_v58 = vpop.permute.xlu0 %660  ;;  %v657_v23 = vpop.permute.xlu1 %656 }
 0x377   :  { %v693_v24 = vsel %vm56_vm1, %v692_v22, %v657_v23 }
 0x378   :  { %v695_v59 = vsel %vm694_vm0, %v693_v24, %v661_v58 }
 0x37a   :  { %v669_v25 = vpop.permute.xlu0 %668  ;;  %v665_v17 = vpop.permute.xlu1 %664 }
 0x37b   :  { %v697_v26 = vsel %vm696_vm2, %v695_v59, %v665_v17 }
 0x37c   :  { %v699_v27 = vsel %vm698_vm3, %v697_v26, %v669_v25 }
 0x37d   :  { %701 = vst.msk [vmem:[#allocation2] sm:$0xff] %vm700_vm4, %v699_v27 }
 0x37e   :  { %770 = shalt.err (!%p767_p4)
}
 0x37f   :  { %s771_s22 = scalar_lea.hbm %s971_s5, 128 }
 0x380   :  { %p772_p5 = scmp.ne.s32.totalorder %s971_s5, %s771_s22  ;;  %p775_p6 = scmp.lt.u32.totalorder %s771_s22, %s971_s5 }
 0x382   :  { %p777_p7 = pnand %p775_p6, %p772_p5 }
 0x384   :  { %780 = shalt.err (!%p777_p7)
}
 0x385   :  { %711 = dma.vmem_to_hbm [thread:$0]  %s709_s18, 128, %s971_s5, [#allocation3]  }
 0x386   :  { %781 = dma.done.wait [#allocation3], 128  }
 0x387   :  { %782 = vsyncadd [#allocation3], 4294967168 }
 0x388   :  { %715 = vsyncpa [#allocation3], 1 }

// kernel: _forward_conv.1
= control target key start
LH: loop header
LB: loop body
LE: loop exit
PB: predicated region body
PF: predicated region fallthrough
CT: control target
= control target key end

     0   :  { %s493_s15 = smov 0   ;;  %s537_s0 = inlined_call_operand.vmem [shape: f32[2,8,16], index: 0, kind: input, shape index: {}]   ;;  %s538_s1 = inlined_call_operand.vmem [shape: f32[32,8], index: 1, kind: input, shape index: {}]   ;;  %s539_s2 = inlined_call_operand.vmem [shape: f32[8,1], index: 2, kind: input, shape index: {}]   ;;  %s540_s3 = inlined_call_operand.vmem [shape: f32[2,8,16], index: 3, kind: output, shape index: {0}]   ;;  %s541_s4 = inlined_call_operand.vmem [shape: f32[2,8,16], index: 4, kind: output, shape index: {1}]  }
   0x1 LB: > { %s416_s16 = sadd.s32 4294967295, %s463_s15   ;;  %p420_p0 = scmp.ge.s32.totalorder %s463_s15, 1  ;;  %s463_s15 = sphi %s493_s15, %s15_s15  }
   0x2   : > { %p164_p1 = scmp.lt.s32.totalorder %s463_s15, 3 }
   0x4   : > { %p165_p2 = pnand %p420_p0, %p164_p1 }
   0x5   : > { %p192_p3 = scmp.lt.s32.totalorder (!%p165_p2), %s416_s16, 1  ;;  %v205_v0 = vld [vmem:[%s538_s1] sm:$0xff] (!%p165_p2)  ;;  %vm209_vm0 = vcmask (!%p165_p2), 64512   ;;  %v207_v1 = vld [vmem:[%s538_s1 + $0x10] sm:$0xff] (!%p165_p2)  ;;  %v465_v3 = vmov (!%p165_p2), 0   ;;  %v206_v5 = vld [vmem:[%s538_s1 + $0x8] sm:$0xff] (!%p165_p2) }
   0x6   : > { %168 = sbr.rel (%p165_p2) target bundleno = 352 (0x160), region = 32  ;;  %437 = vmatprep.mubr.msk.f32.mxu0 (!%p165_p2), %vm209_vm0, %v205_v0  ;;  %440 = vmatprep.mubr.msk.f32.mxu1 (!%p165_p2), %vm209_vm0, %v207_v1  ;;  %v319_v2 = vld [vmem:[%s539_s2] sm:$0xff] (!%p165_p2)  ;;  %v208_v6 = vld [vmem:[%s538_s1 + $0x18] sm:$0xff] (!%p165_p2)  ;;  %s466_s5 = smov (!%p165_p2), 127   ;;  %vm317_vm1 = vcmask (!%p165_p2), 121856   ;;  %vm311_vm2 = vcmask (!%p165_p2), 7168  }
   0x7   : > { %456 = vset.pattern.permute.xlu0 (!%p165_p2), %v465_v3  ;;  %s467_s6 = smov (!%p165_p2), 1   ;;  %vm327_vm3 = vcmask (!%p165_p2), 130048  }
   0x8   : > { %323 = vperm.xlu0 (!%p165_p2), %456, %v319_v2  }
   0xd   : > { %s543_s16 = smov (!%p192_p3, %s416_s16), 1 }
   0xe   : > { %s512_s23 = sshll.u32 %s543_s16, 3 }
   0xf   : > { %s195_s26 = scalar_lea.vmem %s537_s0, %s512_s23  ;;  %s199_s9 = scalar_lea.vmem %s540_s3, %s512_s23 }
  0x10   : > { %v204_v4 = vld [vmem:[%s195_s26] sm:$0xff]  ;;  %s203_s12 = scalar_lea.vmem %s541_s4, %s512_s23 }
  0x11   : > { %435 = vmatprep.subr.mxu0 %v204_v4  ;;  %443 = vmatprep.subr.mxu1 %v204_v4 }
  0x12   : > { %436 = vmatpush3.msra.mxu0 %v204_v4  ;;  %444 = vmatpush3.msra.mxu1 %v204_v4 }
  0x13   : > { %438 = vmatmul.mubr.msk.f32.vlgmr.msra.gmra.mrb[0].mxu0 %vm209_vm0, %v206_v5  ;;  %441 = vmatmul.mubr.msk.f32.vlgmr.msra.gmra.mrb[0].mxu1 %vm209_vm0, %v208_v6 }
  0x87   : > { %v324_v11 = vpop.permute.xlu0 %323 }
  0xe6   : > { %v439_v7 = vpop.f32.mrb[0].mxu0  ;;  %v442_v8 = vpop.f32.mrb[0].mxu1 }
  0xe7   : > { %314 = vrot.lane.b32.xlu1 %v442_v8, %s466_s5  ;;  %v298_v9 = vpop.f32.mrb[1].mxu1  ;;  %308 = vrot.lane.b32.xlu0 %v439_v7, %s467_s6  ;;  %v288_v10 = vpop.f32.mrb[1].mxu0 }
 0x159   : > { %v315_v12 = vpop.permute.xlu1 %314  ;;  %v309_v13 = vpop.permute.xlu0 %308 }
 0x15a   : > { %v318_v14 = vsel %vm317_vm1, %v315_v12, 0.0  ;;  %v312_v15 = vsel %vm311_vm2, 0.0, %v309_v13 }
 0x15b   : > { %v329_v16 = vadd.f32 %v318_v14, %v298_v9  ;;  %v320_v17 = vadd.f32 %v312_v15, %v288_v10 }
 0x15d   : > { %v330_v18 = vadd.f32 %v329_v16, %v324_v11  ;;  %v326_v19 = vadd.f32 %v324_v11, %v320_v17 }
 0x15f   : > { %331 = vst.msk [vmem:[%s203_s12] sm:$0xff] %vm327_vm3, %v330_v18  ;;  %328 = vst.msk [vmem:[%s199_s9] sm:$0xff] %vm327_vm3, %v326_v19 }
 0x160 PF: > { %s15_s15 = sadd.s32 1, %s463_s15  }
 0x161   : > { %p12_p4 = scmp.ge.s32.totalorder %s15_s15, 4  }
 0x163   :  { %14 = sbr.rel (!%p12_p4) target bundleno = 1 (0x1), region = 74 }

</bundles_post_ra>
